<compile_context>
chip_gen: v7x
topology: tpu7x:2x2x1
jax: 0.10.0
libtpu: 0.0.40
codegen_flags: <defaults>
</compile_context>

<pallas_src>
import jax
import jax.numpy as jnp
from jax.experimental import pallas as pl
from jax.experimental.pallas import tpu as pltpu

BN_EPS = 1e-5
LANE = 128
SUBLANE = 8
NEG_LOGIT = -1e30  # padded-logit bias (f32 only): exp underflows to exactly 0


# ----------------------------------------------------------------------------
# Small helpers
# ----------------------------------------------------------------------------
def _cdiv(a, b):
    return -(-a // b)


def _round_up(a, b):
    return _cdiv(a, b) * b


def _vmem_capacity_bytes():
    """Physical VMEM of this chip, with a conservative (v7x per-TC) fallback."""
    try:
        cap = getattr(pltpu.get_tpu_info(), "vmem_capacity_bytes", None)
        if cap:
            return int(cap)
    except Exception:
        pass
    return 64 << 20  # v7x per-TensorCore; conservative for v5e/v6e (128 MiB)


def _vmem_tile_bytes(shape, itemsize):
    """Approx VMEM footprint of one buffer of `shape` incl. (8,128) tile padding."""
    shape = tuple(int(s) for s in shape)
    if len(shape) == 1:
        shape = (1,) + shape
    lead = 1
    for s in shape[:-2]:
        lead *= s
    sub = _round_up(shape[-2], SUBLANE)
    lane = _round_up(shape[-1], LANE)
    return lead * sub * lane * int(itemsize)


# ----------------------------------------------------------------------------
# Kernel: 3 matmuls + 2 ReLUs + masked softmax, everything resident in VMEM.
# Refs: x (TB, d_in), w1t (H, d_in), b1 (1, H), w2 (H, H), b2 (1, H),
#       w3 (H, O_pad), b3 (1, O_pad), o (TB, O_pad)
# ----------------------------------------------------------------------------
def _mlp_kernel(x_ref, w1t_ref, b1_ref, w2_ref, b2_ref, w3_ref, b3_ref, o_ref):
    wdt = w1t_ref.dtype  # MXU operand dtype (f32 or bf16); accumulation stays f32
    x = x_ref[...]

    # fc1 + ReLU.  w1 stored transposed (H, d_in) -> d_in lane-dense; contract
    # over d_in (trans_b form).  BN1 is folded into fc2's weights/bias.
    h = jax.lax.dot_general(
        x.astype(wdt), w1t_ref[...],
        dimension_numbers=(((1,), (1,)), ((), ())),
        preferred_element_type=jnp.float32) + b1_ref[...]
    h = jnp.maximum(h, 0.0)

    # fc2' (eval-mode BN1 folded in) + ReLU.  BN2 is folded into fc3.
    h = jnp.dot(h.astype(wdt), w2_ref[...],
                preferred_element_type=jnp.float32) + b2_ref[...]
    h = jnp.maximum(h, 0.0)

    # fc3' (BN2 folded in) + softmax over the lane axis.  Padded output columns
    # carry bias NEG_LOGIT (f32) -> exp == 0 -> they never perturb real classes.
    logits = jnp.dot(h.astype(wdt), w3_ref[...],
                     preferred_element_type=jnp.float32) + b3_ref[...]
    z = logits - jnp.max(logits, axis=-1, keepdims=True)
    e = jnp.exp(z)
    denom = jnp.sum(e, axis=-1, keepdims=True)
    # exact reciprocal so the 1e-5 validation holds (mem-bound: EUP slack anyway)
    o_ref[...] = (e * pl.reciprocal(denom, approx=False)).astype(o_ref.dtype)


# ----------------------------------------------------------------------------
# Parameter prep: fold eval-mode BatchNorms into the following Linear layers,
# lane-pad the output dim, store w1 transposed.  Done ONCE, not per call.
# ----------------------------------------------------------------------------
def fold_and_pad_params(p, *, weight_dtype=jnp.float32):
    # BN(h) = h * a + c  with  a = g * rsqrt(v + eps),  c = be - m * a
    a1 = p["g1"] * jax.lax.rsqrt(p["v1"] + BN_EPS)
    c1 = p["be1"] - p["m1"] * a1
    a2 = p["g2"] * jax.lax.rsqrt(p["v2"] + BN_EPS)
    c2 = p["be2"] - p["m2"] * a2

    w1t = p["w1"].T                        # (H, d_in): kills the 16x lane-pad bloat
    b1 = p["b1"]
    w2 = a1.reshape(-1, 1) * p["w2"]       # scale rows of W2 by a1
    b2 = c1 @ p["w2"] + p["b2"]
    w3 = a2.reshape(-1, 1) * p["w3"]
    b3 = c2 @ p["w3"] + p["b3"]

    out_features = w3.shape[1]
    out_pad = _round_up(out_features, LANE)
    if out_pad != out_features:
        pad = out_pad - out_features
        w3 = jnp.pad(w3, ((0, 0), (0, pad)))                              # zero cols
        b3 = jnp.pad(b3, ((0, 0), (0, pad)), constant_values=NEG_LOGIT)   # f32 only

    return dict(
        w1t=w1t.astype(weight_dtype), b1=b1.astype(jnp.float32),
        w2=w2.astype(weight_dtype), b2=b2.astype(jnp.float32),
        w3=w3.astype(weight_dtype), b3=b3.astype(jnp.float32),
        out_features=out_features,
    )


# ----------------------------------------------------------------------------
# Wrapper
# ----------------------------------------------------------------------------
def neural_network_forward(x, fp, *, batch_tile=1024, activation_dtype=None):
    """x: (B, input_size).  fp: output of fold_and_pad_params.

    activation_dtype=jnp.bfloat16 halves the dominant HBM stream (x) but may
    not hold a 1e-5 tolerance; default keeps x's dtype (f32 for validation).
    """
    B, d_in = x.shape
    out_features = fp["out_features"]
    out_pad = fp["w3"].shape[1]
    hidden = fp["w1t"].shape[0]

    if activation_dtype is not None and x.dtype != activation_dtype:
        x = x.astype(activation_dtype)
    x_item = jnp.dtype(x.dtype).itemsize

    weights = (fp["w1t"], fp["b1"], fp["w2"], fp["b2"], fp["w3"], fp["b3"])
    w_vmem = sum(_vmem_tile_bytes(w.shape, jnp.dtype(w.dtype).itemsize)
                 for w in weights)
    w_hbm = sum(int(w.size) * jnp.dtype(w.dtype).itemsize for w in weights)

    cap = _vmem_capacity_bytes()

    # Bandwidth-dominated kernel: tell XLA's scheduler so it overlaps neighbors.
    cost = pl.CostEstimate(
        flops=int(2 * B * (d_in * hidden + hidden * hidden + hidden * out_pad)),
        transcendentals=int(B * out_pad),
        bytes_accessed=int(B * d_in * x_item + w_hbm + B * out_pad * 4),
    )

    def _slice_cols(y):
        return y if out_pad == out_features else y[:, :out_features]

    # ---- small-problem path: gridless, everything resident in VMEM once ----
    gridless_bytes = (_vmem_tile_bytes((B, d_in), x_item) + w_vmem
                      + _vmem_tile_bytes((B, out_pad), 4)
                      + 2 * _vmem_tile_bytes((B, LANE), 4))        # h intermediates
    if B <= batch_tile and gridless_bytes <= 0.4 * cap:
        y = pl.pallas_call(
            _mlp_kernel,
            out_shape=jax.ShapeDtypeStruct((B, out_pad), jnp.float32),
            cost_estimate=cost,
            compiler_params=pltpu.CompilerParams(
                vmem_limit_bytes=int(min(cap, max(2 * gridless_bytes, 32 << 20)))),
        )(x, *weights)
        return _slice_cols(y)

    # ---- batch-tiled path: grid over the batch axis only, weights resident ----
    # Size the x double-buffer against real VMEM, leaving room for the resident
    # weights and the output double-buffer.
    budget = int(0.4 * cap) - 2 * w_vmem
    per_row = 2 * (d_in * x_item + (out_pad + 2 * LANE) * 4)
    tb = min(int(batch_tile),
             max(budget // max(per_row, 1), SUBLANE),
             _round_up(B, SUBLANE))
    tb = max(SUBLANE, (tb // SUBLANE) * SUBLANE)
    steps = _cdiv(B, tb)

    # v7x megacore: batch axis is "parallel"; prefer an even step count so both
    # TensorCores get equal work (no effect on single-TC v5e/v6e).
    if steps > 1 and steps % 2 == 1:
        tb_even = max(SUBLANE, _round_up(_cdiv(B, steps + 1), SUBLANE))
        if _cdiv(B, tb_even) % 2 == 0:
            tb, steps = tb_even, _cdiv(B, tb_even)

    need = (2 * _vmem_tile_bytes((tb, d_in), x_item) + 2 * w_vmem
            + 2 * _vmem_tile_bytes((tb, out_pad), 4)
            + 4 * _vmem_tile_bytes((tb, LANE), 4))
    params = pltpu.CompilerParams(
        dimension_semantics=("parallel",),
        vmem_limit_bytes=int(min(cap, max(2 * need, 32 << 20))),
    )

    # No host-side jnp.pad(x) / y[:B]: the last grid block is partial.  Pallas
    # drops OOB output rows; softmax is row-local so garbage tail rows in the
    # partial input block never contaminate real rows.
    x_spec = pl.BlockSpec((tb, d_in), lambda i: (i, 0))
    out_spec = pl.BlockSpec((tb, out_pad), lambda i: (i, 0))

    def _weight_specs(single_buffer):
        specs = []
        for w in weights:
            kw = {"pipeline_mode": pl.Buffered(1)} if single_buffer else {}
            specs.append(pl.BlockSpec(w.shape, lambda i, n=w.ndim: (0,) * n, **kw))
        return specs

    def _call(specs):
        return pl.pallas_call(
            _mlp_kernel,
            out_shape=jax.ShapeDtypeStruct((B, out_pad), jnp.float32),
            grid=(steps,),
            in_specs=[x_spec] + specs,
            out_specs=out_spec,
            compiler_params=params,
            cost_estimate=cost,
        )(x, *weights)

    try:
        # Constant index_map -> a second buffer per resident weight is waste.
        y = _call(_weight_specs(True))
    except Exception:
        # pipeline_mode=pl.Buffered(1) unsupported by this jax build; default
        # double-buffered weights are still small after the w1 transpose.
        y = _call(_weight_specs(False))
    return _slice_cols(y)


# ----------------------------------------------------------------------------
# Synthetic parameters matching the PyTorch module's shapes (eval mode).
# ----------------------------------------------------------------------------
def init_params(key, input_size, hidden_size, output_size):
    ks = jax.random.split(key, 8)

    def linear(kw, kb, fan_in, fan_out):
        bound = 1.0 / jnp.sqrt(fan_in)
        w = jax.random.uniform(kw, (fan_in, fan_out), jnp.float32, -bound, bound)
        bias = jax.random.uniform(kb, (1, fan_out), jnp.float32, -bound, bound)
        return w, bias

    w1, b1 = linear(ks[0], ks[1], input_size, hidden_size)
    w2, b2 = linear(ks[2], ks[3], hidden_size, hidden_size)
    w3, b3 = linear(ks[4], ks[5], hidden_size, output_size)

    g1 = jnp.ones((1, hidden_size), jnp.float32)
    be1 = jnp.zeros((1, hidden_size), jnp.float32)
    m1 = 0.1 * jax.random.normal(ks[6], (1, hidden_size), jnp.float32)
    v1 = jnp.ones((1, hidden_size), jnp.float32) + 0.05

    g2 = jnp.ones((1, hidden_size), jnp.float32)
    be2 = jnp.zeros((1, hidden_size), jnp.float32)
    m2 = 0.1 * jax.random.normal(ks[7], (1, hidden_size), jnp.float32)
    v2 = jnp.ones((1, hidden_size), jnp.float32) + 0.1

    return dict(w1=w1, b1=b1, g1=g1, be1=be1, m1=m1, v1=v1,
                w2=w2, b2=b2, g2=g2, be2=be2, m2=m2, v2=v2,
                w3=w3, b3=b3)


def _reference(x, p):
    """Pure-JAX reference using the UNfolded parameters (explicit eval-mode BN)."""
    def bn(h, g, be, m, v):
        return (h - m) / jnp.sqrt(v + BN_EPS) * g + be
    h = jnp.maximum(x @ p["w1"] + p["b1"], 0.0)
    h = bn(h, p["g1"], p["be1"], p["m1"], p["v1"])
    h = jnp.maximum(h @ p["w2"] + p["b2"], 0.0)
    h = bn(h, p["g2"], p["be2"], p["m2"], p["v2"])
    logits = h @ p["w3"] + p["b3"]
    return jax.nn.softmax(logits, axis=1)


if __name__ == "__main__":
    # Shapes implied by the module: input_size = len(words), hidden_size = 8,
    # output_size = len(classes).  Small synthetic values here.
    batch, input_size, hidden_size, output_size = 8, 256, 8, 4

    key = jax.random.PRNGKey(0)
    k_x, k_p, k_xb = jax.random.split(key, 3)
    x = jax.random.normal(k_x, (batch, input_size), jnp.float32)
    raw_params = init_params(k_p, input_size, hidden_size, output_size)
    folded = fold_and_pad_params(raw_params)  # fold BN + transpose w1 + pad, once

    # --- small batch: gridless single-shot path (byte-based cutoff) ---
    out = jax.block_until_ready(neural_network_forward(x, folded))
    ref = _reference(x, raw_params)
    assert out.shape == (batch, output_size)
    assert jnp.allclose(out, ref, atol=1e-5, rtol=1e-5), "mismatch vs reference (small)"
    assert jnp.allclose(jnp.sum(out, axis=1), 1.0, atol=1e-5), "softmax rows must sum to 1"

    # --- larger batch: tiled path, B not a multiple of the tile -> partial
    #     last block (no host-side pad / slice of x), even grid for v7x ---
    big_batch = 600
    xb = jax.random.normal(k_xb, (big_batch, input_size), jnp.float32)
    out_b = jax.block_until_ready(
        neural_network_forward(xb, folded, batch_tile=256))
    ref_b = _reference(xb, raw_params)
    assert out_b.shape == (big_batch, output_size)
    assert jnp.allclose(out_b, ref_b, atol=1e-5, rtol=1e-5), "mismatch vs reference (tiled)"
    assert jnp.allclose(jnp.sum(out_b, axis=1), 1.0, atol=1e-5)

    print("KERNEL_OK")
</pallas_src>

<mosaic_0001>
module attributes {stable_mosaic.version = 11 : i64} {
  func.func @_mlp_kernel(%arg0: memref<8x256xf32, #tpu.memory_space<vmem>>, %arg1: memref<8x256xf32, #tpu.memory_space<vmem>>, %arg2: memref<1x8xf32, #tpu.memory_space<vmem>>, %arg3: memref<8x8xf32, #tpu.memory_space<vmem>>, %arg4: memref<1x8xf32, #tpu.memory_space<vmem>>, %arg5: memref<8x128xf32, #tpu.memory_space<vmem>>, %arg6: memref<1x128xf32, #tpu.memory_space<vmem>>, %arg7: memref<8x128xf32, #tpu.memory_space<vmem>>) attributes {dimension_semantics = [], scalar_prefetch = 0 : i64, scratch_operands = 0 : i64, tpu.core_type = #tpu.core_type<tc>} {
    %c0 = arith.constant 0 : index
    %c0_0 = arith.constant 0 : index
    %0 = vector.load %arg0[%c0, %c0_0] : memref<8x256xf32, #tpu.memory_space<vmem>>, vector<8x256xf32>
    %c0_1 = arith.constant 0 : index
    %c0_2 = arith.constant 0 : index
    %1 = vector.load %arg1[%c0_1, %c0_2] : memref<8x256xf32, #tpu.memory_space<vmem>>, vector<8x256xf32>
    %cst = arith.constant dense<0.000000e+00> : vector<8x8xf32>
    %2 = tpu.matmul %0, %1, %cst {dimension_numbers = #tpu.dot_dimension_numbers<[1], [1], [0], [0], [0, 0, 1, 0], [], []>} : vector<8x256xf32>, vector<8x256xf32>, vector<8x8xf32> -> vector<8x8xf32>
    %c0_3 = arith.constant 0 : index
    %c0_4 = arith.constant 0 : index
    %3 = vector.load %arg2[%c0_3, %c0_4] : memref<1x8xf32, #tpu.memory_space<vmem>>, vector<1x8xf32>
    %4 = vector.broadcast %3 : vector<1x8xf32> to vector<8x8xf32>
    %5 = arith.addf %2, %4 : vector<8x8xf32>
    %cst_5 = arith.constant 0.000000e+00 : f32
    %6 = vector.broadcast %cst_5 : f32 to vector<8x8xf32>
    %7 = arith.maximumf %5, %6 : vector<8x8xf32>
    %c0_6 = arith.constant 0 : index
    %c0_7 = arith.constant 0 : index
    %8 = vector.load %arg3[%c0_6, %c0_7] : memref<8x8xf32, #tpu.memory_space<vmem>>, vector<8x8xf32>
    %cst_8 = arith.constant dense<0.000000e+00> : vector<8x8xf32>
    %9 = tpu.matmul %7, %8, %cst_8 {dimension_numbers = #tpu.dot_dimension_numbers<[1], [0], [0], [1], [0, 0, 1, 1], [], []>} : vector<8x8xf32>, vector<8x8xf32>, vector<8x8xf32> -> vector<8x8xf32>
    %c0_9 = arith.constant 0 : index
    %c0_10 = arith.constant 0 : index
    %10 = vector.load %arg4[%c0_9, %c0_10] : memref<1x8xf32, #tpu.memory_space<vmem>>, vector<1x8xf32>
    %11 = vector.broadcast %10 : vector<1x8xf32> to vector<8x8xf32>
    %12 = arith.addf %9, %11 : vector<8x8xf32>
    %cst_11 = arith.constant 0.000000e+00 : f32
    %13 = vector.broadcast %cst_11 : f32 to vector<8x8xf32>
    %14 = arith.maximumf %12, %13 : vector<8x8xf32>
    %c0_12 = arith.constant 0 : index
    %c0_13 = arith.constant 0 : index
    %15 = vector.load %arg5[%c0_12, %c0_13] : memref<8x128xf32, #tpu.memory_space<vmem>>, vector<8x128xf32>
    %cst_14 = arith.constant dense<0.000000e+00> : vector<8x128xf32>
    %16 = tpu.matmul %14, %15, %cst_14 {dimension_numbers = #tpu.dot_dimension_numbers<[1], [0], [0], [1], [0, 0, 1, 1], [], []>} : vector<8x8xf32>, vector<8x128xf32>, vector<8x128xf32> -> vector<8x128xf32>
    %c0_15 = arith.constant 0 : index
    %c0_16 = arith.constant 0 : index
    %17 = vector.load %arg6[%c0_15, %c0_16] : memref<1x128xf32, #tpu.memory_space<vmem>>, vector<1x128xf32>
    %18 = vector.broadcast %17 : vector<1x128xf32> to vector<8x128xf32>
    %19 = arith.addf %16, %18 : vector<8x128xf32>
    %cst_17 = arith.constant dense<0xFF800000> : vector<8xf32>
    %20 = vector.multi_reduction <maximumf>, %19, %cst_17 [1] : vector<8x128xf32> to vector<8xf32>
    %21 = vector.shape_cast %20 : vector<8xf32> to vector<8x1xf32>
    %22 = vector.broadcast %21 : vector<8x1xf32> to vector<8x128xf32>
    %23 = arith.subf %19, %22 : vector<8x128xf32>
    %24 = math.exp %23 : vector<8x128xf32>
    %cst_18 = arith.constant dense<0.000000e+00> : vector<8xf32>
    %25 = vector.multi_reduction <add>, %24, %cst_18 [1] : vector<8x128xf32> to vector<8xf32>
    %26 = vector.shape_cast %25 : vector<8xf32> to vector<8x1xf32>
    %27 = tpu.reciprocal %26 : vector<8x1xf32> -> vector<8x1xf32>
    %28 = vector.broadcast %27 : vector<8x1xf32> to vector<8x128xf32>
    %29 = arith.mulf %24, %28 : vector<8x128xf32>
    %c0_19 = arith.constant 0 : index
    %c0_20 = arith.constant 0 : index
    %30 = vector.load %arg7[%c0_19, %c0_20] : memref<8x128xf32, #tpu.memory_space<vmem>>, vector<8x128xf32>
    tpu.vector_store %arg7[%c0_19, %c0_20], %29 {strides = array<i32>} : memref<8x128xf32, #tpu.memory_space<vmem>>, vector<8x128xf32>,
    return
  }
}

</mosaic_0001>

<bundles_post_ra>
// kernel: tpu_custom_call.1
= control target key start
LH: loop header
LB: loop body
LE: loop exit
PB: predicated region body
PF: predicated region fallthrough
CT: control target
= control target key end

     0   :  { %12 = vsyncpa [#allocation3], 0  ;;  %s519_s0 = inlined_call_operand.hbm [shape: f32[8,256], index: 0, kind: input, shape index: {}]   ;;  %s520_s1 = inlined_call_operand.hbm [shape: f32[8,256], index: 1, kind: input, shape index: {}]   ;;  %s521_s2 = inlined_call_operand.vmem [shape: f32[1,8], index: 2, kind: input, shape index: {}]   ;;  %s522_s3 = inlined_call_operand.vmem [shape: f32[8,8], index: 3, kind: input, shape index: {}]   ;;  %s523_s4 = inlined_call_operand.vmem [shape: f32[1,8], index: 4, kind: input, shape index: {}]   ;;  %s524_s5 = inlined_call_operand.vmem [shape: f32[8,128], index: 5, kind: input, shape index: {}]   ;;  %s525_s6 = inlined_call_operand.vmem [shape: f32[1,128], index: 6, kind: input, shape index: {}]   ;;  %s526_s7 = inlined_call_operand.hbm [shape: f32[8,128], index: 7, kind: output, shape index: {}]  }
   0x1   :  { %13 = vsyncpa [#allocation6], 0 }
   0x2   :  { %14 = vsyncpa [#allocation4], 0  ;;  %s423_s24 = smov [#allocation2]   ;;  %s424_s26 = smov [#allocation5]  }
   0x3   :  { %s21_s25 = sshll.u32 %s423_s24, 4  ;;  %s31_s27 = sshll.u32 %s424_s26, 4  ;;  %s22_s25 = int_to_ptr.vmem [resolvable:$true] %s21_s25  ;;  %s32_s27 = int_to_ptr.vmem [resolvable:$true] %s31_s27 }
   0x4   :  { %s351_s30 = scalar_lea.hbm %s519_s0, 256 }
   0x5   :  { %p352_p0 = scmp.ne.s32.totalorder %s519_s0, %s351_s30  ;;  %p355_p1 = scmp.lt.u32.totalorder %s351_s30, %s519_s0 }
   0x7   :  { %p357_p2 = pnand %p355_p1, %p352_p0 }
   0x9   :  { %360 = shalt.err (!%p357_p2)
}
   0xa   :  { %s361_s12 = scalar_lea.vmem %s22_s25, 256  ;;  %p366_p4 = scmp.lt.s32.totalorder %s22_s25, %s22_s25 }
   0xb   :  { %p362_p3 = scmp.ne.s32.totalorder %s22_s25, %s361_s12  ;;  %p367_p5 = scmp.lt.s32.totalorder %s361_s12, %s361_s12 }
   0xd   :  { %p368_p6 = por %p367_p5, %p366_p4 }
   0xf   :  { %p369_p7 = pnand %p368_p6, %p362_p3 }
  0x11   :  { %372 = shalt.err (!%p369_p7)
}
  0x12   :  { %24 = dma.hbm_to_vmem [thread:$0]  %s519_s0, 256, %s22_s25, [#allocation3]  }
  0x13   :  { %s373_s17 = scalar_lea.hbm %s520_s1, 256 }
  0x14   :  { %p374_p8 = scmp.ne.s32.totalorder %s520_s1, %s373_s17  ;;  %p377_p9 = scmp.lt.u32.totalorder %s373_s17, %s520_s1 }
  0x16   :  { %p379_p10 = pnand %p377_p9, %p374_p8 }
  0x18   :  { %382 = shalt.err (!%p379_p10)
}
  0x19   :  { %s383_s22 = scalar_lea.vmem %s32_s27, 256  ;;  %p388_p12 = scmp.lt.s32.totalorder %s32_s27, %s32_s27 }
  0x1a   :  { %p384_p11 = scmp.ne.s32.totalorder %s32_s27, %s383_s22  ;;  %p389_p13 = scmp.lt.s32.totalorder %s383_s22, %s383_s22 }
  0x1c   :  { %p390_p0 = por %p389_p13, %p388_p12 }
  0x1e   :  { %p391_p1 = pnand %p390_p0, %p384_p11 }
  0x20   :  { %394 = shalt.err (!%p391_p1)
}
  0x21   :  { %34 = dma.hbm_to_vmem [thread:$0]  %s520_s1, 256, %s32_s27, [#allocation6]  }
  0x22   :  { %417 = dma.done.wait [#allocation3], 256  }
  0x23   :  { %418 = vsyncadd [#allocation3], 4294967040 }
  0x24   :  { %419 = dma.done.wait [#allocation6], 256  }
  0x25   :  { %420 = vsyncadd [#allocation6], 4294967040  ;;  %v54_v0 = vld [vmem:[#allocation5 + $0x8] sm:$0xff]  ;;  %v53_v1 = vld [vmem:[#allocation5] sm:$0xff]  ;;  %v425_v4 = vmov 0.0   ;;  %vm426_vm0 = vmmov 0  }
  0x26   :  { %v52_v2 = vld [vmem:[#allocation2 + $0x8] sm:$0xff]  ;;  %62 = vmatprep.subr.mxu0 %v54_v0  ;;  %v51_v3 = vld [vmem:[#allocation2] sm:$0xff]  ;;  %332 = vmatprep.subr.mxu1 %v425_v4  ;;  %vm141_vm1 = vcmask 64512  }
  0x27   :  { %126 = vmatprep.mubr.f32.mxu0 %v52_v2  ;;  %63 = vmatpush1.xpose.msra.mxu0 %v53_v1  ;;  %v133_v5 = vld [vmem:[%s522_s3] sm:$0xff] }
  0x28   :  { %333 = vmatpush3.msra.mxu1 %v133_v5  ;;  %334 = vmatprep.mubr.msk.f32.mxu1 %vm426_vm0, %v425_v4  ;;  %v323_v6 = vld [vmem:[%s521_s2] ss:$0 sm:$0xff] }
  0x29   :  { %337 = vmatprep.subr.mxu1 %v425_v4  ;;  %v216_v11 = vld [vmem:[%s524_s5] sm:$0xff] }
  0x2a   :  { %127 = vmatmul.mubr.f32.vlgmr.msra.gmra.mrb[0].mxu0 %v51_v3  ;;  %v324_v12 = vld [vmem:[%s523_s4] ss:$0 sm:$0xff]  ;;  %s427_s4 = smov [#allocation7]  }
  0x2b   :  { %v326_v17 = vld [vmem:[%s525_s6] ss:$0 sm:$0xff]  ;;  %s313_s5 = sshll.u32 %s427_s4, 4  ;;  %s314_s5 = int_to_ptr.vmem [resolvable:$true] %s313_s5 }
  0x2c   :  { %s395_s8 = scalar_lea.vmem %s314_s5, 128  ;;  %p400_p3 = scmp.lt.s32.totalorder %s314_s5, %s314_s5 }
  0x2d   :  { %p396_p2 = scmp.ne.s32.totalorder %s314_s5, %s395_s8  ;;  %p401_p4 = scmp.lt.s32.totalorder %s395_s8, %s395_s8 }
  0x2f   :  { %p402_p5 = por %p401_p4, %p400_p3 }
  0x31   :  { %p403_p6 = pnand %p402_p5, %p396_p2 }
  0xfd   :  { %v128_v7 = vpop.f32.mrb[0].mxu0 }
  0xfe   :  { %v129_v8 = vadd.f32 %v323_v6, %v128_v7  ;;  %v130_v9 = vpop.f32.mrb[1].mxu0 }
 0x100   :  { %v132_v10 = vmax.f32 %v129_v8, 0.0 }
 0x102   :  { %335 = vmatmul.mubr.msk.f32.vlgmr.msra.gmra.mrb[0].mxu1 %vm141_vm1, %v132_v10 }
 0x103   :  { %339 = vmatprep.mubr.msk.f32.mxu1 %vm426_vm0, %v425_v4  ;;  %338 = vmatpush3.msra.mxu1 %v216_v11 }
 0x1d5   :  { %v211_v13 = vpop.f32.mrb[0].mxu1 }
 0x1d6   :  { %v212_v14 = vadd.f32 %v324_v12, %v211_v13  ;;  %v336_v15 = vpop.f32.mrb[1].mxu1 }
 0x1d8   :  { %v215_v16 = vmax.f32 %v212_v14, 0.0 }
 0x1da   :  { %340 = vmatmul.mubr.msk.f32.vlgmr.msra.gmra.mrb[2].mxu1 %vm141_vm1, %v215_v16 }
 0x2ad   :  { %v293_v18 = vpop.f32.mrb[2].mxu1 }
 0x2ae   :  { %v294_v19 = vadd.f32 %v326_v17, %v293_v18  ;;  %v341_v20 = vpop.f32.mrb[3].mxu1 }
 0x2b0   :  { %297 = vmax.xlane.f32.xlu0 %v294_v19 }
 0x33d   :  { %v298_v21 = vpop.xlane.xlu0 %297 }
 0x33e   :  { %v299_v22 = vsub.f32 %v294_v19, %v298_v21 }
 0x340   :  { %v300_v23 = vmul.f32 1.442695, %v299_v22 }
 0x342   :  { %347 = vpow2.f32 %v300_v23 }
 0x34c   :  { %v348_v24 = vpop.eup %347 }
 0x34d   :  { %302 = vadd.xlane.f32.xlu0 %v348_v24 }
 0x3da   :  { %v303_v25 = vpop.xlane.xlu0 %302 }
 0x3db   :  { %349 = vrcp.f32 %v303_v25 }
 0x3e5   :  { %v350_v26 = vpop.eup %349 }
 0x3e6   :  { %v305_v27 = vmul.f32 %v350_v26, %v348_v24 }
 0x3e8   :  { %306 = vst [vmem:[#allocation7] sm:$0xff] %v305_v27 }
 0x3e9   :  { %406 = shalt.err (!%p403_p6)
}
 0x3ea   :  { %s407_s10 = scalar_lea.hbm %s526_s7, 128 }
 0x3eb   :  { %p408_p7 = scmp.ne.s32.totalorder %s526_s7, %s407_s10  ;;  %p411_p8 = scmp.lt.u32.totalorder %s407_s10, %s526_s7 }
 0x3ed   :  { %p413_p9 = pnand %p411_p8, %p408_p7 }
 0x3ef   :  { %416 = shalt.err (!%p413_p9)
}
 0x3f0   :  { %316 = dma.vmem_to_hbm [thread:$0]  %s314_s5, 128, %s526_s7, [#allocation4]  }
 0x3f1   :  { %421 = dma.done.wait [#allocation4], 128  }
 0x3f2   :  { %422 = vsyncadd [#allocation4], 4294967168 }
 0x3f3   :  { %320 = vsyncpa [#allocation3], 1 }
 0x3f4   :  { %321 = vsyncpa [#allocation6], 1 }
 0x3f5   :  { %322 = vsyncpa [#allocation4], 1 }

</bundles_post_ra>
